<compile_context>
chip_gen: v7x
topology: tpu7x:2x2x1
jax: 0.10.0
libtpu: 0.0.40
codegen_flags: <defaults>
</compile_context>

<pallas_src>
import numpy as np
import jax
import jax.numpy as jnp
from jax.experimental import pallas as pl
from jax.experimental.pallas import tpu as pltpu


def _round_up(x, m):
    return ((x + m - 1) // m) * m


def _siren_kernel(x_ref, w_ref, b_ref, o_ref):
    # x_ref: (TMB, P*K)     bf16 packed im2col tile (P output positions / row)
    # w_ref: (P*K, C_lane)  bf16 block-diagonal, omega-scaled weights
    # b_ref: (1, C_lane)    f32  bias row (tiled P times)
    # o_ref: (TMB, C_lane)  bf16 output tile (lane = packed position x C_out)
    z = jnp.dot(x_ref[...], w_ref[...], preferred_element_type=jnp.float32)
    o_ref[...] = jnp.sin(z + b_ref[...]).astype(o_ref.dtype)


def _im2col(x, k):
    """x: (N, C, H, W) -> patches (N*Ho*Wo, C*k*k), columns in (ci, kh, kw) order."""
    N, C, H, W = x.shape
    Ho, Wo = H - k + 1, W - k + 1
    cols = [x[:, :, i:i + Ho, j:j + Wo] for i in range(k) for j in range(k)]
    patches = jnp.stack(cols, axis=2)                     # (N, C, k*k, Ho, Wo)
    patches = patches.reshape(N, C * k * k, Ho, Wo)
    patches = patches.transpose(0, 2, 3, 1).reshape(N * Ho * Wo, C * k * k)
    return patches, Ho, Wo


def _packing_factor(c_out, max_lanes=1024):
    """Smallest P with P*c_out a multiple of 128 (fully lane-dense output).
    Falls back to P=1 (pad C_out up to 128) if that P would blow past
    max_lanes of packed output width."""
    if c_out % 128 == 0:
        return 1
    p = int(np.lcm(c_out, 128) // c_out)
    return 1 if p * c_out > max_lanes else p


def _choose_tmb(mb_total, target_steps=8, max_tmb=2048):
    """Packed rows per grid step.  VMEM is never the binding constraint for
    this kernel (working set is ~1 MiB even at the cap), so tile for step
    count instead: >=2 steps lets v7x megacore + output-DMA pipelining engage,
    ~target_steps keeps the ~0.35us per-step overhead negligible."""
    tmb = _round_up(max(1, pl.cdiv(mb_total, target_steps)), 8)   # sublane-aligned
    return int(min(tmb, max_tmb, _round_up(mb_total, 8)))


def siren_layer(x_nchw, weight, bias, omega, *,
                compute_dtype=jnp.bfloat16, out_dtype=jnp.bfloat16,
                out_layout="NCHW", tmb=None):
    """Forward of SIRENLayer: sin(conv2d(omega * x) + b), VALID padding, stride 1.

    x_nchw : (N, C_in, H, W)     float32
    weight : (C_out, C_in, k, k) float32 (PyTorch conv weight layout)
    bias   : (C_out,)            float32
    out_layout: "NCHW" (matches the PyTorch module) or "NHWC" (skips the final
                transpose — preferred when chaining SIREN layers).
    """
    N, C_in, H, W = x_nchw.shape
    C_out, _, k, _ = weight.shape
    K = C_in * k * k

    # im2col in bf16 (halves the k*k-amplified wrapper traffic).
    # TODO(synk): fuse im2col into the kernel (k*k shifted matmuls) for large inputs.
    patches, Ho, Wo = _im2col(x_nchw.astype(compute_dtype), k)      # (M, K) bf16
    M = N * Ho * Wo

    # Lane packing: P output positions x C_out channels per 128-lane group.
    P = _packing_factor(C_out)
    C_pack = P * C_out
    C_lane = _round_up(C_pack, 128)       # == C_pack except in the fallback path
    K_big = P * K

    # Fold omega into the weights; block-diagonal W_big = I_P (x) (K, C_out).
    w_mat = weight.reshape(C_out, K).T * jnp.asarray(omega, jnp.float32)   # (K, C_out)
    w_big = jnp.kron(jnp.eye(P, dtype=jnp.float32), w_mat)                 # (P*K, P*C_out)
    w_big = jnp.pad(w_big, ((0, 0), (0, C_lane - C_pack))).astype(compute_dtype)
    b_big = jnp.pad(jnp.tile(bias.astype(jnp.float32), P),
                    (0, C_lane - C_pack)).reshape(1, C_lane)

    # Pack P consecutive output positions into one row: (Mb_pad, P*K).
    Mb = pl.cdiv(M, P)
    if tmb is None:
        tmb = _choose_tmb(Mb)
    Mb_pad = _round_up(Mb, tmb)
    M_pad = Mb_pad * P
    if M_pad != M:
        patches = jnp.pad(patches, ((0, M_pad - M), (0, 0)))   # garbage rows trimmed below
    patches = patches.reshape(Mb_pad, K_big)                   # free, row-major view

    grid = (Mb_pad // tmb,)
    bytes_accessed = (Mb_pad * K_big * patches.dtype.itemsize
                      + K_big * C_lane * w_big.dtype.itemsize
                      + C_lane * 4
                      + Mb_pad * C_lane * jnp.dtype(out_dtype).itemsize)

    out_packed = pl.pallas_call(
        _siren_kernel,
        out_shape=jax.ShapeDtypeStruct((Mb_pad, C_lane), out_dtype),
        grid=grid,
        in_specs=[
            pl.BlockSpec((tmb, K_big), lambda i: (i, 0)),      # packed patches, tiled over rows
            pl.BlockSpec((K_big, C_lane), lambda i: (0, 0)),   # block-diag weights (resident)
            pl.BlockSpec((1, C_lane), lambda i: (0, 0)),       # bias row (resident)
        ],
        out_specs=pl.BlockSpec((tmb, C_lane), lambda i: (i, 0)),
        compiler_params=pltpu.CompilerParams(
            dimension_semantics=("parallel",),
        ),
        cost_estimate=pl.CostEstimate(
            flops=2 * Mb_pad * K_big * C_lane,
            transcendentals=Mb_pad * C_lane,
            bytes_accessed=bytes_accessed,
        ),
    )(patches, w_big, b_big)

    # Unpack: (Mb_pad, C_lane) -> (M, C_out).  The reshape is free (row-major)
    # and the trim now reads a bf16, C_out-wide array (~32x smaller than the
    # old padded-f32 layout).  Padded M rows (sin(bias) garbage) are dropped.
    out_flat = out_packed[:, :C_pack].reshape(M_pad, C_out)[:M]
    out = out_flat.reshape(N, Ho, Wo, C_out)                   # NHWC
    if out_layout == "NCHW":
        out = out.transpose(0, 3, 1, 2)
    return out


def init_siren_params(key, infeature, outfeature, kernel_size, omega,
                      is_input_layer=False):
    """Deterministic SIREN init matching the PyTorch module's __init__."""
    kw, kb = jax.random.split(key)
    if is_input_layer:
        w_bound = np.sqrt(6.0 / infeature)
    else:
        w_bound = np.sqrt(6.0 / infeature) / omega
    b_bound = 1.0 / np.sqrt(infeature)
    weight = jax.random.uniform(
        kw, (outfeature, infeature, kernel_size, kernel_size),
        minval=-w_bound, maxval=w_bound, dtype=jnp.float32)
    bias = jax.random.uniform(
        kb, (outfeature,), minval=-b_bound, maxval=b_bound, dtype=jnp.float32)
    return weight, bias


def _reference_f32(x, weight, bias, omega):
    """Full-f32 reference: sin(conv2d(omega*x, weight) + bias), VALID padding."""
    y = jax.lax.conv_general_dilated(
        omega * x, weight, window_strides=(1, 1), padding="VALID",
        dimension_numbers=("NCHW", "OIHW", "NCHW"),
        precision=jax.lax.Precision.HIGHEST)
    return jnp.sin(y + bias.reshape(1, -1, 1, 1))


def _reference_bf16(x, weight, bias, omega):
    """Same math with operands rounded to bf16 (matches the kernel's MXU operands)."""
    xb = x.astype(jnp.bfloat16).astype(jnp.float32)
    wb = (weight * omega).astype(jnp.bfloat16).astype(jnp.float32)
    y = jax.lax.conv_general_dilated(
        xb, wb, window_strides=(1, 1), padding="VALID",
        dimension_numbers=("NCHW", "OIHW", "NCHW"),
        precision=jax.lax.Precision.HIGHEST)
    return jnp.sin(y + bias.reshape(1, -1, 1, 1))


if __name__ == "__main__":
    key = jax.random.PRNGKey(0)
    k_x, k_p = jax.random.split(key)

    # Small shapes consistent with the module's forward (NCHW conv input).
    N, C_in, H, W = 2, 4, 16, 16
    C_out, ksize = 8, 3
    omega = 30.0

    x = jax.random.normal(k_x, (N, C_in, H, W), dtype=jnp.float32)
    weight, bias = init_siren_params(k_p, C_in, C_out, ksize, omega,
                                     is_input_layer=False)

    out = jax.block_until_ready(siren_layer(x, weight, bias, omega))
    assert out.shape == (N, C_out, H - ksize + 1, W - ksize + 1)
    assert out.dtype == jnp.bfloat16
    out_f32 = np.asarray(out.astype(jnp.float32))

    # Tight check vs. a reference using the same bf16 operand rounding; the
    # tolerance also covers the bf16 output cast (|sin| <= 1 -> abs err <~ 4e-3).
    ref_lp = jax.block_until_ready(_reference_bf16(x, weight, bias, omega))
    np.testing.assert_allclose(out_f32, np.asarray(ref_lp), rtol=0.0, atol=8e-3)

    # Loose check vs. the full-f32 PyTorch-equivalent reference (bounds the
    # bf16 MXU-operand rounding amplified by omega=30 plus the bf16 output cast).
    ref = jax.block_until_ready(_reference_f32(x, weight, bias, omega))
    np.testing.assert_allclose(out_f32, np.asarray(ref), rtol=0.0, atol=7e-2)

    print("KERNEL_OK")
</pallas_src>

<mosaic_0001>
module attributes {stable_mosaic.version = 11 : i64} {
  func.func @_siren_kernel(%arg0: i32, %arg1: memref<8x576xbf16, #tpu.memory_space<vmem>>, %arg2: memref<576x128xbf16, #tpu.memory_space<vmem>>, %arg3: memref<1x128xf32, #tpu.memory_space<vmem>>, %arg4: memref<8x128xbf16, #tpu.memory_space<vmem>>) attributes {dimension_semantics = [#tpu.dimension_semantics<parallel>], iteration_bounds = array<i64: 4>, scalar_prefetch = 0 : i64, scratch_operands = 0 : i64, tpu.core_type = #tpu.core_type<tc>, window_params = [{transform_indices = @transform_0, window_bounds = array<i64: 8, 576>}, {pipeline_mode = #tpu.pipeline_mode<synchronous>, transform_indices = @transform_1, window_bounds = array<i64: 576, 128>}, {pipeline_mode = #tpu.pipeline_mode<synchronous>, transform_indices = @transform_2, window_bounds = array<i64: 1, 128>}, {transform_indices = @transform_3, window_bounds = array<i64: 8, 128>}]} {
    %c0 = arith.constant 0 : index
    %c0_0 = arith.constant 0 : index
    %0 = vector.load %arg1[%c0, %c0_0] : memref<8x576xbf16, #tpu.memory_space<vmem>>, vector<8x576xbf16>
    %c0_1 = arith.constant 0 : index
    %c0_2 = arith.constant 0 : index
    %1 = vector.load %arg2[%c0_1, %c0_2] : memref<576x128xbf16, #tpu.memory_space<vmem>>, vector<576x128xbf16>
    %cst = arith.constant dense<0.000000e+00> : vector<8x128xf32>
    %2 = tpu.matmul %0, %1, %cst {dimension_numbers = #tpu.dot_dimension_numbers<[1], [0], [0], [1], [0, 0, 1, 1], [], []>} : vector<8x576xbf16>, vector<576x128xbf16>, vector<8x128xf32> -> vector<8x128xf32>
    %c0_3 = arith.constant 0 : index
    %c0_4 = arith.constant 0 : index
    %3 = vector.load %arg3[%c0_3, %c0_4] : memref<1x128xf32, #tpu.memory_space<vmem>>, vector<1x128xf32>
    %4 = vector.broadcast %3 : vector<1x128xf32> to vector<8x128xf32>
    %5 = arith.addf %2, %4 : vector<8x128xf32>
    %6 = math.sin %5 : vector<8x128xf32>
    %7 = arith.truncf %6 : vector<8x128xf32> to vector<8x128xbf16>
    %c0_5 = arith.constant 0 : index
    %c0_6 = arith.constant 0 : index
    %8 = vector.load %arg4[%c0_5, %c0_6] : memref<8x128xbf16, #tpu.memory_space<vmem>>, vector<8x128xbf16>
    tpu.vector_store %arg4[%c0_5, %c0_6], %7 {strides = array<i32>} : memref<8x128xbf16, #tpu.memory_space<vmem>>, vector<8x128xbf16>,
    return
  }
  func.func @transform_0(%arg0: i32) -> (i32, i32) {
    %c0_i32 = arith.constant 0 : i32
    %c0_i32_0 = arith.constant 0 : i32
    return %arg0, %c0_i32 : i32, i32
  }
  func.func @transform_1(%arg0: i32) -> (i32, i32) {
    %c0_i32 = arith.constant 0 : i32
    %c0_i32_0 = arith.constant 0 : i32
    %c0_i32_1 = arith.constant 0 : i32
    return %c0_i32, %c0_i32_0 : i32, i32
  }
  func.func @transform_2(%arg0: i32) -> (i32, i32) {
    %c0_i32 = arith.constant 0 : i32
    %c0_i32_0 = arith.constant 0 : i32
    %c0_i32_1 = arith.constant 0 : i32
    return %c0_i32, %c0_i32_0 : i32, i32
  }
  func.func @transform_3(%arg0: i32) -> (i32, i32) {
    %c0_i32 = arith.constant 0 : i32
    %c0_i32_0 = arith.constant 0 : i32
    return %arg0, %c0_i32 : i32, i32
  }
}

</mosaic_0001>

<bundles_post_ra>
// kernel: tpu_custom_call.1
= control target key start
LH: loop header
LB: loop body
LE: loop exit
PB: predicated region body
PF: predicated region fallthrough
CT: control target
= control target key end

     0   :  { %8 = vsyncpa [#allocation3], 0  ;;  %s1461_s0 = inlined_call_operand.hbm [shape: bf16[32,576], index: 0, kind: input, shape index: {}]   ;;  %s1462_s1 = inlined_call_operand.hbm [shape: bf16[576,128], index: 1, kind: input, shape index: {}]   ;;  %s1463_s2 = inlined_call_operand.vmem [shape: f32[1,128], index: 2, kind: input, shape index: {}]   ;;  %s1464_s3 = inlined_call_operand.hbm [shape: bf16[32,128], index: 3, kind: output, shape index: {}]  }
   0x1   :  { %10 = vsyncpa [#allocation3 + $0x1], 0 }
   0x2   :  { %11 = vsyncpa [#allocation6], 0 }
   0x3   :  { %12 = vsyncpa [#allocation4], 0 }
   0x4   :  { %14 = vsyncpa [#allocation4 + $0x1], 0  ;;  %s1244_s12 = smov 0   ;;  %s1246_s13 = smov 0  }
   0x5   :  { %s1248_s14 = smov 0   ;;  %s1250_s15 = smov 0  }
   0x6 LB: > { %s1265_s16 = sadd.s32 4294967295, %s1209_s15   ;;  %s842_s17 = sadd.s32 4294967294, %s1209_s15   ;;  %s1209_s15 = sphi %s1250_s15, %s1483_s15   ;;  %s1205_s14 = sphi %s1248_s14, %s1482_s14   ;;  %s1201_s13 = sphi %s1246_s13, %s1481_s13   ;;  %s1197_s12 = sphi %s1244_s12, %s1480_s12  }
   0x7   : > { %p40_p0 = scmp.ne.s32.totalorder %s1201_s13, %s1197_s12  ;;  %p1465_p1 = scmp.eq.s32.totalorder %s1265_s16, 0 }
   0x8   : > { %p112_p3 = scmp.eq.s32.totalorder %s842_s17, 3  ;;  %p843_p5 = scmp.ge.s32.totalorder %s1209_s15, 1 }
   0x9   : > { %p1274_p4 = por %p1465_p1, %p40_p0  ;;  %p119_p7 = scmp.lt.s32.totalorder %s1209_s15, 5 }
   0xa   : > { %p1279_p6 = por %p112_p3, %p40_p0  ;;  %s1211_s21 = smov [#allocation5]  }
   0xb   : > { %s1468_s18 = scalar_select %p1274_p4, 1, 0 }
   0xc   : > { %s1469_s19 = scalar_select %p1279_p6, 1, 0 }
   0xd   : > { %p1284_p8 = pnand %p843_p5, %p119_p7  ;;  %s131_s22 = sshll.u32 %s1211_s21, 4  ;;  %s132_s22 = int_to_ptr.vmem [resolvable:$true] %s131_s22 }
   0xe   : > { %s1297_s24 = sadd.s32 1, %s1209_s15   ;;  %s27_s25 = sadd.s32 1, %s1205_s14 }
   0xf   : > { %s1470_s20 = scalar_select %p1284_p8, 1, 0 }
  0x10   : > { %p977_p9 = pneg %p1284_p8  ;;  %s24_s26 = ssub.s32 %s1209_s15, %s1297_s24 }
  0x11   : > { %s1081_s29 = scalar_lea.hbm %s1462_s1, 4608 }
  0x12   : > { %p1292_p10 = pnand %p977_p9, %p1465_p1  ;;  %p1082_p11 = scmp.ne.s32.totalorder %s1462_s1, %s1081_s29 }
  0x13   : > { %p1088_p3 = scmp.lt.u32.totalorder %s1081_s29, %s1462_s1 }
  0x14   : > { %p1083_p12 = pneg %p1292_p10 }
  0x16   : > { %p1084_p13 = pnand %p1083_p12, %p1082_p11 }
  0x18   : > { %p1085_p0 = pneg %p1084_p13 }
  0x1a   : > { %p1090_p5 = pnand %p1088_p3, %p1085_p0 }
  0x1c   : > { %1093 = shalt.err (!%p1090_p5)
}
  0x1d   : > { %s1094_s7 = scalar_lea.vmem %s132_s22, 4608  ;;  %p1102_p2 = scmp.lt.s32.totalorder %s132_s22, %s132_s22 }
  0x1e   : > { %p1095_p7 = scmp.ne.s32.totalorder %s132_s22, %s1094_s7  ;;  %p1103_p6 = scmp.lt.s32.totalorder %s1094_s7, %s1094_s7 }
  0x20   : > { %p1097_p9 = pnand %p1095_p7, %p1083_p12  ;;  %p1104_p4 = por %p1103_p6, %p1102_p2 }
  0x22   : > { %p1098_p1 = pneg %p1097_p9 }
  0x24   : > { %p1105_p8 = pnand %p1104_p4, %p1098_p1 }
  0x26   : > { %1108 = shalt.err (!%p1105_p8)
}
  0x27   : > { %s1212_s8 = smov 64   ;;  %s1213_s9 = smov 4  }
  0x28   : > { %980 = dma.hbm_to_vmem [thread:$0]  (!%p1292_p10), %s1462_s1, 4608, %s132_s22, [#allocation6], %s1212_s8, %s1212_s8, %s1213_s9  }
  0x29   : > { %p25_p11 = scmp.eq.s32.totalorder %s24_s26, 0  ;;  %p34_p2 = scmp.ne.s32.totalorder %s1205_s14, %s1201_s13 }
  0x2a   : > { %p35_p1 = scmp.eq.s32.totalorder %s1209_s15, 0  ;;  %p990_p4 = scmp.lt.s32.totalorder %s1209_s15, 4 }
  0x2b   : > { %s1323_s17 = scalar_select %p25_p11, %s1205_s14, %s27_s25  }
  0x2c   : > { %p36_p6 = por %p35_p1, %p34_p2  ;;  %p1472_p8 = scmp.eq.s32.totalorder %s1265_s16, 3 }
  0x2d   : > { %s148_s27 = sand.u32 1, %s1205_s14   ;;  %s963_s28 = smul.u32 320, %s1209_s15 }
  0x2e   : > { %p1327_p12 = por %p1472_p8, %p34_p2  ;;  %s962_s29 = smul.u32 20, %s148_s27 }
  0x2f   : > { %p1333_p13 = pnand %p990_p4, %p36_p6  ;;  %s1340_s25 = scalar_lea.hbm %s1461_s0, %s963_s28 }
  0x30   : > { %s152_s30 = scalar_lea.vmem [#allocation2], %s962_s29  ;;  %s149_s5 = scalar_lea.sflag [#allocation3], %s148_s27 }
  0x31   : > { %s160_s4 = sshll.u32 %s152_s30, 4  ;;  %s1109_s6 = scalar_lea.hbm %s1340_s25, 320  ;;  %s1342_s4 = int_to_ptr.vmem [resolvable:$true] %s160_s4 }
  0x32   : > { %p1110_p10 = scmp.ne.s32.totalorder %s1340_s25, %s1109_s6  ;;  %p1111_p0 = pneg %p1333_p13 }
  0x33   : > { %s1114_s9 = scalar_lea.hbm %s1461_s0, 1280  ;;  %p1115_p7 = scmp.lt.u32.totalorder %s1340_s25, %s1461_s0 }
  0x34   : > { %p1112_p3 = pnand %p1111_p0, %p1110_p10  ;;  %p1116_p9 = scmp.lt.u32.totalorder %s1114_s9, %s1109_s6 }
  0x35   : > { %p1118_p2 = scmp.lt.u32.totalorder %s1109_s6, %s1340_s25 }
  0x36   : > { %p1113_p5 = pneg %p1112_p3  ;;  %p1117_p11 = por %p1116_p9, %p1115_p7 }
  0x38   : > { %p1119_p1 = por %p1118_p2, %p1117_p11 }
  0x3a   : > { %p1120_p4 = pnand %p1119_p1, %p1113_p5 }
  0x3c   : > { %1123 = shalt.err (!%p1120_p4)
}
  0x3d   : > { %s1124_s27 = scalar_lea.vmem %s1342_s4, 320  ;;  %s1214_s28 = smov [#allocation2]  }
  0x3e   : > { %p1125_p6 = scmp.ne.s32.totalorder %s1342_s4, %s1124_s27  ;;  %s1129_s29 = sshll.u32 %s1214_s28, 4  ;;  %s1130_s29 = int_to_ptr.vmem [resolvable:$false] %s1129_s29 }
  0x3f   : > { %s1131_s22 = scalar_lea.vmem %s1130_s29, 640  ;;  %p1132_p3 = scmp.lt.s32.totalorder %s1342_s4, %s1130_s29 }
  0x40   : > { %p1127_p8 = pnand %p1125_p6, %p1111_p0  ;;  %p1133_p7 = scmp.lt.s32.totalorder %s1131_s22, %s1124_s27 }
  0x42   : > { %p1128_p10 = pneg %p1127_p8  ;;  %p1134_p9 = por %p1133_p7, %p1132_p3 }
  0x44   : > { %p1135_p11 = pnand %p1134_p9, %p1128_p10 }
  0x46   : > { %1138 = shalt.err (!%p1135_p11)
}
  0x47   : > { %984 = dma.hbm_to_vmem [thread:$0]  (!%p1333_p13), %s1340_s25, 320, %s1342_s4, %s149_s5  }
  0x48   : > { %p1475_p5 = scmp.ne.s32.totalorder %s1470_s20, 0 }
  0x49   : > { %s1372_s26 = sand.u32 (!%p1475_p5), 1, %s1201_s13   ;;  %p1476_p0 = scmp.ne.s32.totalorder (!%p1475_p5), %s1468_s18, 0 }
  0x4a   : > { %169 = sbr.rel (%p1475_p5) target bundleno = 443 (0x1bb), region = 32  ;;  %s172_s6 = scalar_lea.sflag (!%p1475_p5), [#allocation3], %s1372_s26 }
  0x4b   : > { %s964_s30 = smul.u32 (!%p1475_p5), 20, %s1372_s26 }
  0x4d   : > { %s1376_s7 = scalar_lea.vmem (!%p1475_p5), [#allocation2], %s964_s30 }
  0x51   : > { %1184 = dma.done.wait (%p1476_p0), %s172_s6, 320  }
  0x52   : > { %1186 = vsyncadd (%p1476_p0), %s172_s6, 4294966976  ;;  %p1477_p13 = scmp.eq.s32.totalorder %s1265_s16, 0 }
  0x54   : > { %1188 = dma.done.wait (%p1477_p13), [#allocation6], 4608   ;;  %p1478_p2 = pmov %p1477_p13 }
  0x55   : > { %v1036_v0 = vld [vmem:[#allocation5 + $0x40] sm:$0xff]   ;;  %v1040_v4 = vld [vmem:[#allocation5 + $0x48] sm:$0xff]   ;;  %v1044_v8 = vld [vmem:[#allocation5 + $0x50] sm:$0xff]   ;;  %v1215_v35 = vmov 0.0   ;;  %vm1216_vm0 = vmmov 0   ;;  %vm518_vm1 = vcmask 523264  }
  0x56   : > { %1190 = vsyncadd (%p1478_p2), [#allocation6], 4294962688  ;;  %v1037_v1 = vld [vmem:[#allocation5] sm:$0xff]   ;;  %901 = vmatprep.subr.bf16.mxu0 %v1036_v0  ;;  %v1041_v5 = vld [vmem:[#allocation5 + $0x8] sm:$0xff]   ;;  %s849_s23 = sshll.u32 %s1372_s26, 2  ;;  %s898_s25 = sshll.u32 %s1265_s16, 6 }
  0x57   : > { %v1038_v2 = vld [vmem:[#allocation5 + $0xc0] sm:$0xff]   ;;  %902 = vmatpush3.bf16.msra.mxu0 %v1037_v1  ;;  %v1042_v6 = vld [vmem:[#allocation5 + $0xc8] sm:$0xff]   ;;  %v1045_v9 = vld [vmem:[#allocation5 + $0x10] sm:$0xff]   ;;  %s201_s4 = scalar_lea.vmem [#allocation7], %s849_s23  ;;  %s1418_s10 = scalar_lea.hbm %s1464_s3, %s898_s25 }
  0x58   : > { %v1039_v3 = vld [vmem:[#allocation5 + $0x80] sm:$0xff]   ;;  %923 = vmatprep.subr.bf16.mxu1 %v1038_v2  ;;  %903 = vmatprep.subr.bf16.mxu0 %v1040_v4  ;;  %v1043_v7 = vld [vmem:[#allocation5 + $0x88] sm:$0xff]   ;;  %v1046_v10 = vld [vmem:[#allocation5 + $0xd0] sm:$0xff]   ;;  %s762_s5 = sshll.u32 %s201_s4, 4  ;;  %s749_s11 = scalar_lea.sflag [#allocation4], %s1372_s26  ;;  %s1420_s5 = int_to_ptr.vmem [resolvable:$true] %s762_s5 }
  0x59   : > { %924 = vmatpush3.bf16.msra.mxu1 %v1039_v3  ;;  %v1047_v11 = vld [vmem:[#allocation5 + $0x90] sm:$0xff]   ;;  %v1048_v12 = vld [vmem:[#allocation5 + $0x58] sm:$0xff]   ;;  %v1052_v16 = vld [vmem:[#allocation5 + $0x60] sm:$0xff]   ;;  %s1139_s16 = scalar_lea.vmem %s1420_s5, 64  ;;  %s1223_s27 = smov [#allocation7]  }
  0x5a   : > { %925 = vmatprep.subr.bf16.mxu1 %v1042_v6  ;;  %v1049_v13 = vld [vmem:[#allocation5 + $0x18] sm:$0xff]   ;;  %v1053_v17 = vld [vmem:[#allocation5 + $0x20] sm:$0xff]   ;;  %v1056_v20 = vld [vmem:[#allocation5 + $0x68] sm:$0xff]   ;;  %p1140_p1 = scmp.ne.s32.totalorder %s1420_s5, %s1139_s16  ;;  %s1143_s28 = sshll.u32 %s1223_s27, 4  ;;  %s1144_s28 = int_to_ptr.vmem [resolvable:$false] %s1143_s28 }
  0x5b   : > { %904 = vmatpush3.bf16.msra.mxu0 %v1041_v5  ;;  %v1050_v14 = vld [vmem:[#allocation5 + $0xd8] sm:$0xff]   ;;  %v1054_v18 = vld [vmem:[#allocation5 + $0xe0] sm:$0xff]   ;;  %v1057_v21 = vld [vmem:[#allocation5 + $0x28] sm:$0xff]   ;;  %s1145_s29 = scalar_lea.vmem %s1144_s28, 128  ;;  %p1146_p8 = scmp.lt.s32.totalorder %s1420_s5, %s1144_s28 }
  0x5c   : > { %905 = vmatprep.subr.bf16.mxu0 %v1044_v8  ;;  %v1051_v15 = vld [vmem:[#allocation5 + $0x98] sm:$0xff]   ;;  %v1055_v19 = vld [vmem:[#allocation5 + $0xa0] sm:$0xff]   ;;  %v1058_v22 = vld [vmem:[#allocation5 + $0xe8] sm:$0xff]   ;;  %v1217_v8 = vmov 683565275   ;;  %p1141_p4 = pnand %p1140_p1, %p1327_p12  ;;  %p1147_p10 = scmp.lt.s32.totalorder %s1145_s29, %s1139_s16 }
  0x5d   : > { %926 = vmatpush3.bf16.msra.mxu1 %v1043_v7  ;;  %v1059_v23 = vld [vmem:[#allocation5 + $0xa8] sm:$0xff]   ;;  %v1060_v24 = vld [vmem:[#allocation5 + $0x70] sm:$0xff]   ;;  %v1064_v28 = vld [vmem:[#allocation5 + $0x78] sm:$0xff]  }
  0x5e   : > { %927 = vmatprep.subr.bf16.mxu1 %v1046_v10  ;;  %v1061_v25 = vld [vmem:[#allocation5 + $0x30] sm:$0xff]   ;;  %v1065_v29 = vld [vmem:[#allocation5 + $0x38] sm:$0xff]   ;;  %v1072_v39 = vld [vmem:[#allocation5 + $0x100] sm:$0xff]   ;;  %v1218_v10 = vmov 2475754826   ;;  %p1142_p6 = pneg %p1141_p4  ;;  %p1148_p3 = por %p1147_p10, %p1146_p8 }
  0x5f   : > { %906 = vmatpush3.bf16.msra.mxu0 %v1045_v9  ;;  %v1062_v26 = vld [vmem:[#allocation5 + $0xf0] sm:$0xff]   ;;  %v1066_v30 = vld [vmem:[#allocation5 + $0xf8] sm:$0xff]   ;;  %v1073_v40 = vld [vmem:[#allocation5 + $0x108] sm:$0xff]  }
  0x60   : > { %907 = vmatprep.subr.bf16.mxu0 %v1048_v12  ;;  %v1063_v27 = vld [vmem:[#allocation5 + $0xb0] sm:$0xff]   ;;  %v1069_v34 = vld [vmem:[#allocation5 + $0xb8] sm:$0xff]   ;;  %p1149_p7 = pnand %p1148_p3, %p1142_p6 }
  0x61   : > { %928 = vmatpush3.bf16.msra.mxu1 %v1047_v11  ;;  %v203_v31 = vld [vmem:[%s1376_s7] sm:$0xff]  ;;  %v204_v36 = vld [vmem:[%s1376_s7 + $0x8] sm:$0xff]  ;;  %v1076_v43 = vld [vmem:[%s1376_s7 + $0x10] ss:$0 sps:$4 sm:$0xff]  }
  0x62   : > { %929 = vmatprep.subr.bf16.mxu1 %v1050_v14  ;;  %v851_v32 = vcombine.low %v203_v31, %v203_v31  ;;  %v852_v33 = vcombine.high %v203_v31, %v203_v31  ;;  %v853_v37 = vcombine.low %v204_v36, %v204_v36  ;;  %v854_v38 = vcombine.high %v204_v36, %v204_v36  ;;  %v1074_v41 = vld [vmem:[#allocation5 + $0x110] sm:$0xff]   ;;  %v1075_v42 = vld [vmem:[#allocation5 + $0x118] sm:$0xff]  }
  0x63   : > { %908 = vmatpush3.bf16.msra.mxu0 %v1049_v13  ;;  %v850_v45 = vld [vmem:[%s1463_s2] ss:$0 sm:$0xff]  ;;  %v1219_v13 = vmov 2131351028  }
  0x64   : > { %909 = vmatprep.subr.bf16.mxu0 %v1052_v16  ;;  %554 = vmatprep.mubr.bf16.mxu0 %v852_v33  ;;  %v1220_v16 = vmov 2102212464  }
  0x65   : > { %930 = vmatpush3.bf16.msra.mxu1 %v1051_v15  ;;  %594 = vmatprep.mubr.bf16.mxu1 %v854_v38 }
  0x66   : > { %931 = vmatprep.subr.bf16.mxu1 %v1054_v18 }
  0x67   : > { %910 = vmatpush3.bf16.msra.mxu0 %v1053_v17 }
  0x68   : > { %911 = vmatprep.subr.bf16.mxu0 %v1056_v20 }
  0x69   : > { %932 = vmatpush3.bf16.msra.mxu1 %v1055_v19  ;;  %v1221_v19 = vmov 920167782  }
  0x6a   : > { %933 = vmatprep.subr.bf16.mxu1 %v1058_v22  ;;  %v1222_v22 = vmov 1326507024  }
  0x6b   : > { %912 = vmatpush3.bf16.msra.mxu0 %v1057_v21 }
  0x6c   : > { %913 = vmatprep.subr.bf16.mxu0 %v1060_v24 }
  0x6d   : > { %934 = vmatpush3.bf16.msra.mxu1 %v1059_v23 }
  0x6e   : > { %935 = vmatprep.subr.bf16.mxu1 %v1062_v26 }
  0x6f   : > { %914 = vmatpush3.bf16.msra.mxu0 %v1061_v25 }
  0x70   : > { %915 = vmatprep.subr.bf16.mxu0 %v1064_v28 }
  0x71   : > { %936 = vmatpush3.bf16.msra.mxu1 %v1063_v27 }
  0x72   : > { %937 = vmatprep.subr.bf16.mxu1 %v1066_v30 }
  0x73   : > { %916 = vmatpush3.bf16.msra.mxu0 %v1065_v29 }
  0x74   : > { %950 = vmatprep.subr.bf16.mxu0 %v1215_v35 }
  0x75   : > { %938 = vmatpush3.bf16.msra.mxu1 %v1069_v34 }
  0x76   : > { %555 = vmatmul.mubr.bf16.vlgmr.msra.gmra.mrb[0].mxu0 %v851_v32 }
  0x77   : > { %951 = vmatpush3.bf16.msra.mxu0 %v1072_v39  ;;  %958 = vmatprep.mubr.msk.bf16.mxu0 %vm1216_vm0, %v1215_v35 }
  0x78   : > { %595 = vmatmul.mubr.bf16.vlgmr.msra.gmra.mrb[0].mxu1 %v853_v37  ;;  %952 = vmatprep.subr.bf16.mxu0 %v1215_v35 }
  0x7b   : > { %953 = vmatpush3.bf16.msra.mxu0 %v1073_v40 }
  0x7c   : > { %954 = vmatprep.subr.bf16.mxu0 %v1215_v35 }
  0x7f   : > { %955 = vmatpush3.bf16.msra.mxu0 %v1074_v41 }
  0x80   : > { %956 = vmatprep.subr.bf16.mxu0 %v1215_v35 }
  0x83   : > { %957 = vmatpush3.bf16.msra.mxu0 %v1075_v42 }
  0x86   : > { %959 = vmatmul.mubr.msk.bf16.vlgmr.msra.gmra.mrb[4].mxu0 %vm518_vm1, %v1076_v43 }
 0x149   : > { %v917_v44 = vpop.f32.mrb[0].mxu0 }
 0x14a   : > { %v918_v46 = vpop.f32.mrb[1].mxu0 }
 0x14b   : > { %v919_v47 = vadd.f32 %v918_v46, %v917_v44  ;;  %v920_v48 = vpop.f32.mrb[2].mxu0  ;;  %v939_v49 = vpop.f32.mrb[0].mxu1 }
 0x14c   : > { %v921_v50 = vpop.f32.mrb[3].mxu0  ;;  %v940_v51 = vpop.f32.mrb[1].mxu1 }
 0x14d   : > { %v557_v52 = vadd.f32 %v919_v47, %v850_v45  ;;  %v941_v53 = vadd.f32 %v940_v51, %v939_v49  ;;  %v942_v54 = vpop.f32.mrb[2].mxu1 }
 0x14e   : > { %v943_v55 = vpop.f32.mrb[3].mxu1 }
 0x14f   : > { %v597_v56 = vadd.f32 %v941_v53, %v557_v52 }
 0x159   : > { %v636_v57 = vpop.f32.mrb[4].mxu0 }
 0x15a   : > { %v1392_v58 = vadd.f32 %v636_v57, %v597_v56  ;;  %v960_v59 = vpop.f32.mrb[5].mxu0 }
 0x15b   : > { %v639_v60 = vpop.f32.mrb[6].mxu0 }
 0x15c   : > { %v645_v61 = vand.u32 2139095040, %v1392_v58  ;;  %v961_v62 = vpop.f32.mrb[7].mxu0  ;;  %v642_v2 = vand.u32 2147483647, %v1392_v58  ;;  %vm644_vm9 = vcmp.lt.s32.totalorder %v1392_v58, 0  ;;  %vm734_vm14 = vweird.f32 %v1392_v58 }
 0x15e   : > { %v646_v63 = vshrl.u32 %v645_v61, 23  ;;  %v649_v5 = vand.u32 8388607, %v642_v2  ;;  %vm643_vm10 = vcmp.le.f32.partialorder %v642_v2, 0.7853982 }
 0x160   : > { %v893_v0 = vadd.s32 4294967169, %v646_v63  ;;  %v650_v24 = vor.u32 8388608, %v649_v5 }
 0x162   : > { %v652_v1 = vadd.s32 1, %v893_v0  ;;  %v690_v38 = vshll.u32 %v650_v24, 8 }
 0x164   : > { %vm653_vm2 = vcmp.gt.s32.totalorder %v652_v1, 0 }
 0x165   : > { %v654_v3 = vsel %vm653_vm2, %v652_v1, 0 }
 0x166   : > { %v656_v4 = vand.u32 31, %v654_v3  ;;  %v655_v7 = vshrl.u32 %v654_v3, 5 }
 0x168   : > { %v657_v6 = vsub.s32 32, %v656_v4  ;;  %v659_v9 = vshll.u32 %v1217_v8, %v656_v4  ;;  %v662_v11 = vshll.u32 %v1218_v10, %v656_v4  ;;  %v665_v15 = vshll.u32 %v1219_v13, %v656_v4 }
 0x169   : > { %v668_v18 = vshll.u32 %v1220_v16, %v656_v4  ;;  %v671_v21 = vshll.u32 %v1221_v19, %v656_v4  ;;  %vm674_vm3 = vcmp.lt.s32.totalorder %v655_v7, 1  ;;  %vm677_vm4 = vcmp.lt.s32.totalorder %v655_v7, 4 }
 0x16a   : > { %v660_v12 = vshrl.u32 %v1218_v10, %v657_v6  ;;  %v663_v14 = vshrl.u32 %v1219_v13, %v657_v6  ;;  %v666_v17 = vshrl.u32 %v1220_v16, %v657_v6  ;;  %v669_v20 = vshrl.u32 %v1221_v19, %v657_v6 }
 0x16b   : > { %v672_v23 = vshrl.u32 %v1222_v22, %v657_v6  ;;  %v658_v33 = vshrl.u32 %v1217_v8, %v657_v6  ;;  %vm676_vm5 = vcmp.lt.s32.totalorder %v655_v7, 3  ;;  %vm675_vm6 = vcmp.lt.s32.totalorder %v655_v7, 2 }
 0x16c   : > { %v661_v25 = vor.u32 %v660_v12, %v659_v9  ;;  %v664_v26 = vor.u32 %v663_v14, %v662_v11  ;;  %v667_v27 = vor.u32 %v666_v17, %v665_v15  ;;  %v670_v28 = vor.u32 %v669_v20, %v668_v18 }
 0x16d   : > { %v673_v29 = vor.u32 %v672_v23, %v671_v21 }
 0x16e   : > { %v679_v30 = vsel %vm677_vm4, %v667_v27, 2102212464  ;;  %v682_v31 = vsel %vm674_vm3, %v661_v25, %v664_v26  ;;  %v686_v32 = vsel %vm674_vm3, %v664_v26, %v667_v27  ;;  %v683_v34 = vsel %vm677_vm4, %v670_v28, 920167782 }
 0x16f   : > { %v687_v35 = vsel %vm677_vm4, %v673_v29, 1326507024  ;;  %v684_v36 = vsel %vm676_vm5, %v667_v27, %v683_v34  ;;  %v678_v39 = vsel %vm674_vm3, %v658_v33, %v661_v25  ;;  %v680_v40 = vsel %vm676_vm5, %v664_v26, %v679_v30 }
 0x170   : > { %v688_v37 = vsel %vm676_vm5, %v670_v28, %v687_v35  ;;  %v685_v41 = vsel %vm675_vm6, %v682_v31, %v684_v36  ;;  %v681_v47 = vsel %vm675_vm6, %v678_v39, %v680_v40 }
 0x171   : > { %v689_v42 = vsel %vm675_vm6, %v686_v32, %v688_v37  ;;  %v1401_v45 = vmul.u32.u64.low %v690_v38, %v685_v41  ;;  %v1402_v46 = vmul.u32.u64.high %v690_v38, %v685_v41, %v1401_v45  ;;  %v697_v49 = vmul.u32 %v690_v38, %v681_v47 }
 0x172   : > { %v1398_v43 = vmul.u32.u64.low %v690_v38, %v689_v42  ;;  %v1399_v44 = vmul.u32.u64.high %v690_v38, %v689_v42, %v1398_v43 }
 0x173   : > { %v700_v48 = vadd.s32 1, %v1402_v46 }
 0x174   : > { %vm699_vm7 = vc.u32 %v1399_v44, %v1401_v45  ;;  %v698_v62 = vadd.s32 %v1401_v45, %v1399_v44 }
 0x175   : > { %v701_v50 = vsel %vm699_vm7, %v700_v48, %v1402_v46 }
 0x176   : > { %v702_v51 = vadd.s32 %v701_v50, %v697_v49 }
 0x178   : > { %v703_v52 = vadd.s32 536870912, %v702_v51 }
 0x17a   : > { %v704_v53 = vshrl.u32 %v703_v52, 30 }
 0x17c   : > { %v705_v54 = vshll.u32 %v704_v53, 30  ;;  %v728_v11 = vsub.s32 4, %v704_v53 }
 0x17e   : > { %v706_v55 = vsub.s32 %v702_v51, %v705_v54  ;;  %v729_v14 = vsel %vm644_vm9, %v728_v11, %v704_v53 }
 0x17f   : > { %v731_v16 = vsel %vm643_vm10, 0, %v729_v14 }
 0x180   : > { %v708_v56 = vsub.s32 0, %v706_v55  ;;  %v735_v17 = vadd.s32 3, %v731_v16 }
 0x182   : > { %v894_v57 = vmin.u32 %v708_v56, %v706_v55  ;;  %v736_v18 = vand.u32 3, %v735_v17 }
 0x184   : > { %v710_v59 = vclz %v894_v57  ;;  %vm741_vm11 = vcmp.eq.s32.totalorder %v736_v18, 2  ;;  %vm738_vm12 = vcmp.eq.s32.totalorder %v736_v18, 0  ;;  %vm737_vm13 = vcmp.lt.s32.totalorder %v736_v18, 2 }
 0x186   : > { %v895_v60 = vadd.s32 4294967294, %v710_v59 }
 0x188   : > { %vm896_vm8 = vcmp.lt.s32.totalorder %v895_v60, 0 }
 0x189   : > { %v713_v61 = vsel %vm896_vm8, 0, %v895_v60 }
 0x18a   : > { %v714_v63 = vsub.s32 32, %v713_v61  ;;  %v718_v0 = vsub.s32 4294967266, %v713_v61  ;;  %v715_v1 = vshll.u32 %v706_v55, %v713_v61 }
 0x18c   : > { %v716_v3 = vshrl.u32 %v698_v62, %v714_v63  ;;  %v719_v4 = vadd.s32 127, %v718_v0 }
 0x18e   : > { %v717_v5 = vor.u32 %v716_v3, %v715_v1  ;;  %v720_v6 = vshll.u32 %v719_v4, 23 }
 0x190   : > { %v721_v7 = vor.u32 4788187, %v720_v6  ;;  %v724_v9 = vcvt.s32.f32 %v717_v5 }
 0x192   : > { %v722_v8 = vand.u32 2147483647, %v721_v7 }
 0x194   : > { %v725_v10 = vmul.f32 %v724_v9, %v722_v8 }
 0x196   : > { %v726_v12 = vxor.u32 2147483648, %v725_v10 }
 0x198   : > { %v727_v13 = vsel %vm644_vm9, %v726_v12, %v725_v10 }
 0x199   : > { %v730_v15 = vsel %vm643_vm10, %v1392_v58, %v727_v13 }
 0x19a   : > { %1077 = vcosq.f32 %v730_v15 }
 0x19b   : > { %1079 = vsinq.f32 %v730_v15 }
 0x1a4   : > { %v1078_v19 = vpop.eup %1077 }
 0x1a5   : > { %v1080_v20 = vpop.eup %1079  ;;  %v742_v21 = vxor.u32 2147483648, %v1078_v19 }
 0x1a6   : > { %v739_v22 = vxor.u32 2147483648, %v1080_v20 }
 0x1a7   : > { %v743_v23 = vsel %vm741_vm11, %v742_v21, %v1080_v20 }
 0x1a8   : > { %v740_v2 = vsel %vm738_vm12, %v1078_v19, %v739_v22 }
 0x1a9   : > { %v744_v24 = vsel %vm737_vm13, %v740_v2, %v743_v23 }
 0x1aa   : > { %v745_v25 = vsel %vm734_vm14, nan, %v744_v24 }
 0x1ab   : > { %v746_v26 = vpack.c.bf16 %v745_v25, %v745_v25 }
 0x1ad   : > { %747 = vst [vmem:[%s201_s4] sm:$0xf] %v746_v26 }
 0x1ae   : > { %1152 = shalt.err (!%p1149_p7)
}
 0x1af   : > { %s1153_s22 = scalar_lea.hbm %s1418_s10, 64  ;;  %s1157_s6 = scalar_lea.hbm %s1464_s3, 256 }
 0x1b0   : > { %p1154_p9 = scmp.ne.s32.totalorder %s1418_s10, %s1153_s22  ;;  %p1158_p0 = scmp.lt.u32.totalorder %s1418_s10, %s1464_s3 }
 0x1b1   : > { %p1159_p13 = scmp.lt.u32.totalorder %s1157_s6, %s1153_s22  ;;  %p1161_p1 = scmp.lt.u32.totalorder %s1153_s22, %s1418_s10 }
 0x1b2   : > { %p1155_p11 = pnand %p1154_p9, %p1327_p12 }
 0x1b3   : > { %p1160_p2 = por %p1159_p13, %p1158_p0 }
 0x1b4   : > { %p1156_p5 = pneg %p1155_p11 }
 0x1b5   : > { %p1162_p4 = por %p1161_p1, %p1160_p2 }
 0x1b7   : > { %p1163_p6 = pnand %p1162_p4, %p1156_p5 }
 0x1b9   : > { %1166 = shalt.err (!%p1163_p6)
}
 0x1ba   : > { %975 = dma.vmem_to_hbm [thread:$0]  (%p1327_p12), %s1420_s5, 64, %s1418_s10, %s749_s11  }
 0x1bb PF: > { %p992_p8 = scmp.ge.s32.totalorder %s1209_s15, 2  ;;  %s774_s20 = sand.u32 1, %s1197_s12  }
 0x1bc   : > { %p1479_p10 = scmp.ne.s32.totalorder %s1469_s19, 0  ;;  %s775_s23 = scalar_lea.sflag [#allocation4], %s774_s20 }
 0x1be   : > { %p986_p3 = pnand %p992_p8, %p1479_p10 }
 0x1c0   : > { %1192 = dma.done.wait (!%p986_p3), %s775_s23, 64  }
 0x1c1   : > { %1194 = vsyncadd (!%p986_p3), %s775_s23, 4294967232  ;;  %p17_p7 = scmp.ge.s32.totalorder %s1297_s24, 6   ;;  %s1480_s12 = smov %s1201_s13 }
 0x1c2   : > { %s1481_s13 = smov %s1205_s14  ;;  %s1482_s14 = smov %s1323_s17 }
 0x1c3   : > { %s1483_s15 = smov %s1297_s24  ;;  %19 = sbr.rel (!%p17_p7) target bundleno = 6 (0x6), region = 81 }
 0x1ca   :  { %780 = vsyncpa [#allocation3], 1 }
 0x1cb   :  { %782 = vsyncpa [#allocation3 + $0x1], 1 }
 0x1cc   :  { %783 = vsyncpa [#allocation6], 1 }
 0x1cd   :  { %784 = vsyncpa [#allocation4], 1 }
 0x1ce   :  { %786 = vsyncpa [#allocation4 + $0x1], 1 }

</bundles_post_ra>
